<compile_context>
chip_gen: v7x
topology: tpu7x:2x2x1
jax: 0.10.0
libtpu: 0.0.40
codegen_flags: <defaults>
</compile_context>

<pallas_src>
import functools

import numpy as np

import jax
import jax.numpy as jnp
from jax import lax
from jax.experimental import pallas as pl
from jax.experimental.pallas import tpu as pltpu


def _tv_block_kernel(x_ref, mh_ref, mw_ref, out_ref, *,
                     W, P, R, n_full, tail_rows, num_planes, mask_planes):
    """(P, TL) block of flattened planes -> (1, 1, 2, 128) partial sums."""
    TL = x_ref.shape[1]
    down_shift = (TL - W) % TL      # out[j] = in[j + W]  (row below, same column)
    right_shift = (TL - 1) % TL     # out[j] = in[j + 1]  (same row, next column)

    mh = mh_ref[...]                # (1, TL) f32; 1.0 where the vertical diff is valid
    mw = mw_ref[...]                # (1, TL) f32; 1.0 where the horizontal diff is valid

    plane0 = pl.program_id(0) * P   # first global plane of this block

    def chunk_sums(row0, nrows, mh_b, mw_b):
        xc = x_ref[pl.ds(row0, nrows), :]                  # native dtype
        if mask_planes:
            # cdiv plane grid: zero planes past B*C (their buffer rows hold
            # undefined data from the clamped boundary DMA).
            rows = plane0 + row0 + lax.broadcasted_iota(jnp.int32, (nrows, 1), 0)
            xc = jnp.where(rows < num_planes, xc, jnp.zeros_like(xc))
        # Neighbour values via XLU rolls on the native-dtype chunk.
        x_dn = pltpu.roll(xc, shift=down_shift, axis=1)
        x_rt = pltpu.roll(xc, shift=right_shift, axis=1)
        xf = xc.astype(jnp.float32)
        dh = (x_dn.astype(jnp.float32) - xf) * mh_b
        dw = (x_rt.astype(jnp.float32) - xf) * mw_b
        return jnp.sum(dh * dh), jnp.sum(dw * dw)

    # Hoist the (1, TL) -> (R, TL) mask broadcasts out of the chunk loop
    # (broadcast_in_dim is not CSE'd by JAX).
    mh_b = jnp.broadcast_to(mh, (R, TL))
    mw_b = jnp.broadcast_to(mw, (R, TL))

    def body(c, carry):
        hs, ws = carry
        row0 = c * R
        if R % 8 == 0:
            row0 = pl.multiple_of(row0, 8)
        h2, w2 = chunk_sums(row0, R, mh_b, mw_b)
        return hs + h2, ws + w2

    h_sum, w_sum = lax.fori_loop(
        0, n_full, body, (jnp.float32(0.0), jnp.float32(0.0)))

    if tail_rows:                                          # static tail chunk
        mh_t = jnp.broadcast_to(mh, (tail_rows, TL))
        mw_t = jnp.broadcast_to(mw, (tail_rows, TL))
        h2, w2 = chunk_sums(n_full * R, tail_rows, mh_t, mw_t)
        h_sum = h_sum + h2
        w_sum = w_sum + w2

    # Lane-dense partial-sum block: sublane 0 -> h_tv, sublane 1 -> w_tv.
    sub_i = lax.broadcasted_iota(jnp.int32, (2, 128), 0)
    out_ref[...] = jnp.where(sub_i == 0, h_sum, w_sum)[None, None]


def _pick_lane_tile(H, W, max_elems):
    """Largest k | H with k*W <= max_elems and (k*W) % 128 == 0 (None if none)."""
    best = None
    for k in range(1, H + 1):
        if k * W > max_elems:
            break
        if H % k == 0 and (k * W) % 128 == 0:
            best = k
    return best


def tv_loss(x, tv_loss_weight: float = 1.0, *,
            target_block_bytes: int = 4 * 1024 * 1024):
    """TVLoss.forward(x) for NCHW x, hot path in Pallas."""
    B, C, H, W = x.shape
    BC, HW = B * C, H * W
    itemsize = jnp.dtype(x.dtype).itemsize
    sub = max(8, 8 * (4 // max(1, itemsize)))   # sublane tile: f32 8, bf16 16, int8 32

    # ---------------- lane (within-plane) tiling ----------------
    # Cap the lane tile so worst-case f32 chunk temporaries stay ~1 MiB each.
    tl_max = max(128, 262144 // sub)
    if HW <= tl_max:
        k_rows, TL = H, HW
    else:
        k = _pick_lane_tile(H, W, tl_max)
        if k is None:
            # TODO(synk): pathological W (no 128-aligned whole-row tile fits the
            # budget); whole-plane fallback may need more VMEM for huge planes.
            k_rows, TL = H, HW
        else:
            k_rows, TL = k, k * W
    nL = HW // TL

    # ---------------- plane (B*C) tiling ----------------
    lane_bytes = TL * itemsize
    vmem_cap = max(1, target_block_bytes // lane_bytes)
    want_pb = max(1, -(-4 // nL))               # plane blocks wanted for >= 4 grid steps
    mc_cap = -(-BC // want_pb)

    P = None
    for cap in (min(vmem_cap, mc_cap), vmem_cap):
        if cap >= BC:
            P = BC                               # single plane block (no alignment rule)
            break
        best = 0
        d = sub
        while d <= cap:                          # largest sublane-aligned divisor of BC
            if BC % d == 0:
                best = d
            d += sub
        if best:
            P = best
            break
    if P is None:
        # No aligned divisor of BC fits the VMEM cap: cdiv grid + in-kernel
        # masking of the tail planes (no wrapper-side jnp.pad of the input).
        P = min(BC, max(sub, (vmem_cap // sub) * sub))
    nB = -(-BC // P)
    mask_planes = (nB * P) != BC

    # ---------------- in-kernel row chunking ----------------
    chunk_elems = 32768
    R = min(P, max(sub, ((chunk_elems // TL) // sub) * sub))
    R = max(1, R)
    n_full, tail_rows = P // R, P % R

    xr = x.reshape(BC, HW)                      # contiguous: free reshape

    # Grid-constant masks, built once on the host (no per-element mod in-kernel).
    lane = np.arange(TL)
    mask_h = (lane < TL - W).astype(np.float32)[None, :]
    mask_w = ((lane % W) != (W - 1)).astype(np.float32)[None, :]

    kernel = functools.partial(
        _tv_block_kernel, W=W, P=P, R=R, n_full=n_full, tail_rows=tail_rows,
        num_planes=BC, mask_planes=mask_planes)

    partials = pl.pallas_call(
        kernel,
        out_shape=jax.ShapeDtypeStruct((nB, nL, 2, 128), jnp.float32),
        grid=(nB, nL),
        in_specs=[
            pl.BlockSpec((P, TL), lambda i, l: (i, l)),
            pl.BlockSpec((1, TL), lambda i, l: (0, 0)),   # constant across the grid
            pl.BlockSpec((1, TL), lambda i, l: (0, 0)),
        ],
        out_specs=pl.BlockSpec((1, 1, 2, 128), lambda i, l: (i, l, 0, 0)),
        compiler_params=pltpu.CompilerParams(
            dimension_semantics=("parallel", "parallel"),   # megacore-shardable
            vmem_limit_bytes=48 * 1024 * 1024,  # headroom under v7x's 64 MiB physical
        ),
        cost_estimate=pl.CostEstimate(
            flops=8 * BC * HW,
            bytes_accessed=BC * HW * itemsize + 2 * TL * 4 + nB * nL * 2 * 128 * 4,
            transcendentals=0,
        ),
    )(xr, jnp.asarray(mask_h), jnp.asarray(mask_w))

    sums = jnp.sum(partials[:, :, :, 0], axis=(0, 1))      # one fused reduce
    h_tv, w_tv = sums[0], sums[1]

    if nL > 1:
        # Vertical "seam" pairs straddling lane-tile boundaries (one row pair per
        # boundary): tiny strided slices reduced by XLA in the wrapper.
        x3 = x.reshape(BC, H, W)
        a = x3[:, k_rows - 1:H - 1:k_rows, :].astype(jnp.float32)
        b = x3[:, k_rows:H:k_rows, :].astype(jnp.float32)
        h_tv = h_tv + jnp.sum((b - a) ** 2)

    count_h = C * (H - 1) * W
    count_w = C * H * (W - 1)
    total = jnp.float32(0.0)
    if count_h > 0:                     # guard H == 1 (reference divides by zero)
        total = total + h_tv / count_h
    if count_w > 0:                     # guard W == 1
        total = total + w_tv / count_w
    return (tv_loss_weight * 2.0 / B) * total


def _tv_loss_ref(x, tv_loss_weight: float = 1.0):
    B, C, H, W = x.shape
    xf = x.astype(jnp.float32)
    count_h = C * (H - 1) * W
    count_w = C * H * (W - 1)
    h_tv = jnp.sum((xf[:, :, 1:, :] - xf[:, :, :-1, :]) ** 2)
    w_tv = jnp.sum((xf[:, :, :, 1:] - xf[:, :, :, :-1]) ** 2)
    return tv_loss_weight * 2.0 * (h_tv / count_h + w_tv / count_w) / B


if __name__ == "__main__":
    k0, k1, k2 = jax.random.split(jax.random.PRNGKey(0), 3)

    # Primary small shape from the module's forward (NCHW).
    x = jax.random.normal(k0, (2, 4, 16, 16), dtype=jnp.float32)
    out = jax.block_until_ready(tv_loss(x, tv_loss_weight=1.0))
    ref = _tv_loss_ref(x, tv_loss_weight=1.0)
    assert jnp.allclose(out, ref, rtol=1e-4, atol=1e-6), (out, ref)

    # Odd plane count (B*C = 15): exercises a full-dim, non-8-aligned plane block.
    x2 = jax.random.normal(k1, (3, 5, 16, 16), dtype=jnp.float32)
    out2 = jax.block_until_ready(tv_loss(x2, tv_loss_weight=0.5))
    ref2 = _tv_loss_ref(x2, tv_loss_weight=0.5)
    assert jnp.allclose(out2, ref2, rtol=1e-4, atol=1e-6), (out2, ref2)

    # Larger plane: exercises in-plane lane tiling + the wrapper seam term.
    x3 = jax.random.normal(k2, (1, 2, 256, 256), dtype=jnp.float32)
    out3 = jax.block_until_ready(tv_loss(x3, tv_loss_weight=1.0))
    ref3 = _tv_loss_ref(x3, tv_loss_weight=1.0)
    assert jnp.allclose(out3, ref3, rtol=1e-4, atol=1e-6), (out3, ref3)

    print("KERNEL_OK")
</pallas_src>

<mosaic_0001>
module attributes {stable_mosaic.version = 11 : i64} {
  func.func @_tv_block_kernel(%arg0: i32, %arg1: i32, %arg2: memref<8x256xf32, #tpu.memory_space<vmem>>, %arg3: memref<1x256xf32, #tpu.memory_space<vmem>>, %arg4: memref<1x256xf32, #tpu.memory_space<vmem>>, %arg5: memref<1x1x2x128xf32, #tpu.memory_space<vmem>>) attributes {dimension_semantics = [#tpu.dimension_semantics<parallel>, #tpu.dimension_semantics<parallel>], iteration_bounds = array<i64: 1, 1>, scalar_prefetch = 0 : i64, scratch_operands = 0 : i64, tpu.core_type = #tpu.core_type<tc>, window_params = [{transform_indices = @transform_0, window_bounds = array<i64: 8, 256>}, {pipeline_mode = #tpu.pipeline_mode<synchronous>, transform_indices = @transform_1, window_bounds = array<i64: 1, 256>}, {pipeline_mode = #tpu.pipeline_mode<synchronous>, transform_indices = @transform_2, window_bounds = array<i64: 1, 256>}, {transform_indices = @transform_3, window_bounds = array<i64: 1, 1, 2, 128>}]} {
    %c0 = arith.constant 0 : index
    %c0_0 = arith.constant 0 : index
    %0 = vector.load %arg3[%c0, %c0_0] : memref<1x256xf32, #tpu.memory_space<vmem>>, vector<1x256xf32>
    %c0_1 = arith.constant 0 : index
    %c0_2 = arith.constant 0 : index
    %1 = vector.load %arg4[%c0_1, %c0_2] : memref<1x256xf32, #tpu.memory_space<vmem>>, vector<1x256xf32>
    %2 = vector.shape_cast %0 : vector<1x256xf32> to vector<1x256xf32>
    %3 = vector.broadcast %2 : vector<1x256xf32> to vector<8x256xf32>
    %4 = vector.shape_cast %1 : vector<1x256xf32> to vector<1x256xf32>
    %5 = vector.broadcast %4 : vector<1x256xf32> to vector<8x256xf32>
    %cst = arith.constant 0.000000e+00 : f32
    %cst_3 = arith.constant 0.000000e+00 : f32
    %c0_i32 = arith.constant 0 : i32
    %c8_i32 = arith.constant 8 : i32
    %6 = arith.muli %c0_i32, %c8_i32 : i32
    %7 = tpu.assume_multiple %6, 8 : i32
    %8 = arith.index_cast %7 : i32 to index
    %c0_4 = arith.constant 0 : index
    %9 = vector.load %arg2[%8, %c0_4] : memref<8x256xf32, #tpu.memory_space<vmem>>, vector<8x256xf32>
    %c240_i32 = arith.constant 240 : i32
    %10 = tpu.dynamic_rotate %9 by %c240_i32 dim 1 : vector<8x256xf32>, i32 -> vector<8x256xf32>
    %c255_i32 = arith.constant 255 : i32
    %11 = tpu.dynamic_rotate %9 by %c255_i32 dim 1 : vector<8x256xf32>, i32 -> vector<8x256xf32>
    %12 = arith.subf %10, %9 : vector<8x256xf32>
    %13 = arith.mulf %12, %3 : vector<8x256xf32>
    %14 = arith.subf %11, %9 : vector<8x256xf32>
    %15 = arith.mulf %14, %5 : vector<8x256xf32>
    %16 = arith.mulf %13, %13 : vector<8x256xf32>
    %17 = vector.shape_cast %16 : vector<8x256xf32> to vector<1x8x256xf32>
    %cst_5 = arith.constant dense<0.000000e+00> : vector<1xf32>
    %18 = vector.multi_reduction <add>, %17, %cst_5 [1, 2] : vector<1x8x256xf32> to vector<1xf32>
    %19 = vector.shape_cast %18 : vector<1xf32> to vector<1x1x1xf32>
    %20 = vector.extract %19[0, 0, 0] : f32 from vector<1x1x1xf32>
    %21 = arith.mulf %15, %15 : vector<8x256xf32>
    %22 = vector.shape_cast %21 : vector<8x256xf32> to vector<1x8x256xf32>
    %cst_6 = arith.constant dense<0.000000e+00> : vector<1xf32>
    %23 = vector.multi_reduction <add>, %22, %cst_6 [1, 2] : vector<1x8x256xf32> to vector<1xf32>
    %24 = vector.shape_cast %23 : vector<1xf32> to vector<1x1x1xf32>
    %25 = vector.extract %24[0, 0, 0] : f32 from vector<1x1x1xf32>
    %26 = arith.addf %cst, %20 : f32
    %27 = arith.addf %cst_3, %25 : f32
    %c1_i32 = arith.constant 1 : i32
    %28 = tpu.iota {dimensions = array<i32: 0>} : vector<2x128xi32>
    %c0_i32_7 = arith.constant 0 : i32
    %29 = vector.broadcast %c0_i32_7 : i32 to vector<2x128xi32>
    %30 = arith.cmpi eq, %28, %29 : vector<2x128xi32>
    %31 = vector.broadcast %26 : f32 to vector<2x128xf32>
    %32 = vector.broadcast %27 : f32 to vector<2x128xf32>
    %33 = arith.select %30, %31, %32 : vector<2x128xi1>, vector<2x128xf32>
    %34 = vector.shape_cast %33 : vector<2x128xf32> to vector<1x1x2x128xf32>
    %c0_8 = arith.constant 0 : index
    %c0_9 = arith.constant 0 : index
    %c0_10 = arith.constant 0 : index
    %c0_11 = arith.constant 0 : index
    %35 = vector.load %arg5[%c0_8, %c0_9, %c0_10, %c0_11] : memref<1x1x2x128xf32, #tpu.memory_space<vmem>>, vector<1x1x2x128xf32>
    tpu.vector_store %arg5[%c0_8, %c0_9, %c0_10, %c0_11], %34 {strides = array<i32>} : memref<1x1x2x128xf32, #tpu.memory_space<vmem>>, vector<1x1x2x128xf32>,
    return
  }
  func.func @transform_0(%arg0: i32, %arg1: i32) -> (i32, i32) {
    %c0_i32 = arith.constant 0 : i32
    return %arg0, %arg1 : i32, i32
  }
  func.func @transform_1(%arg0: i32, %arg1: i32) -> (i32, i32) {
    %c0_i32 = arith.constant 0 : i32
    %c0_i32_0 = arith.constant 0 : i32
    %c0_i32_1 = arith.constant 0 : i32
    return %c0_i32, %c0_i32_0 : i32, i32
  }
  func.func @transform_2(%arg0: i32, %arg1: i32) -> (i32, i32) {
    %c0_i32 = arith.constant 0 : i32
    %c0_i32_0 = arith.constant 0 : i32
    %c0_i32_1 = arith.constant 0 : i32
    return %c0_i32, %c0_i32_0 : i32, i32
  }
  func.func @transform_3(%arg0: i32, %arg1: i32) -> (i32, i32, i32, i32) {
    %c0_i32 = arith.constant 0 : i32
    %c0_i32_0 = arith.constant 0 : i32
    %c0_i32_1 = arith.constant 0 : i32
    return %arg0, %arg1, %c0_i32, %c0_i32_0 : i32, i32, i32, i32
  }
}

</mosaic_0001>

<bundles_post_ra>
// kernel: tpu_custom_call.1
= control target key start
LH: loop header
LB: loop body
LE: loop exit
PB: predicated region body
PF: predicated region fallthrough
CT: control target
= control target key end

     0   :  { %8 = vsyncpa [#allocation3], 0  ;;  %s238_s0 = inlined_call_operand.hbm [shape: f32[8,256], index: 0, kind: input, shape index: {}]   ;;  %s239_s1 = inlined_call_operand.vmem [shape: f32[1,256], index: 1, kind: input, shape index: {}]   ;;  %s240_s2 = inlined_call_operand.vmem [shape: f32[1,256], index: 2, kind: input, shape index: {}]   ;;  %s241_s3 = inlined_call_operand.hbm [shape: f32[1,1,2,128], index: 3, kind: output, shape index: {}]  }
   0x1   :  { %9 = vsyncpa [#allocation4], 0  ;;  %s184_s12 = smov [#allocation2]   ;;  %s136_s16 = scalar_lea.hbm %s238_s0, 256 }
   0x2   :  { %s16_s13 = sshll.u32 %s184_s12, 4  ;;  %p137_p0 = scmp.ne.s32.totalorder %s238_s0, %s136_s16  ;;  %s17_s13 = int_to_ptr.vmem [resolvable:$true] %s16_s13 }
   0x3   :  { %p140_p1 = scmp.lt.u32.totalorder %s136_s16, %s238_s0 }
   0x5   :  { %p142_p2 = pnand %p140_p1, %p137_p0 }
   0x7   :  { %145 = shalt.err (!%p142_p2)
}
   0x8   :  { %s146_s21 = scalar_lea.vmem %s17_s13, 256  ;;  %p151_p4 = scmp.lt.s32.totalorder %s17_s13, %s17_s13 }
   0x9   :  { %p147_p3 = scmp.ne.s32.totalorder %s17_s13, %s146_s21  ;;  %p152_p5 = scmp.lt.s32.totalorder %s146_s21, %s146_s21 }
   0xb   :  { %p153_p6 = por %p152_p5, %p151_p4 }
   0xd   :  { %p154_p7 = pnand %p153_p6, %p147_p3 }
   0xf   :  { %157 = shalt.err (!%p154_p7)
}
  0x10   :  { %19 = dma.hbm_to_vmem [thread:$0]  %s238_s0, 256, %s17_s13, [#allocation3]  }
  0x11   :  { %180 = dma.done.wait [#allocation3], 256  }
  0x12   :  { %181 = vsyncadd [#allocation3], 4294967040  ;;  %v54_v0 = vld [vmem:[#allocation2] sm:$0xff]  ;;  %s185_s24 = smov 127   ;;  %s186_s25 = smov 112   ;;  %v55_v1 = vld [vmem:[#allocation2 + $0x8] sm:$0xff]  ;;  %v30_v2 = vlaneseq }
  0x13   :  { %65 = vrot.lane.b32.xlu1 %v54_v0, %s185_s24  ;;  %56 = vrot.lane.b32.xlu0 %v54_v0, %s186_s25  ;;  %v28_v9 = vld [vmem:[%s240_s2] sm:$0x3] }
  0x14   :  { %v31_v3 = vshrl.u32 %v30_v2, 7  ;;  %v61_v4 = vand.u32 127, %v30_v2  ;;  %v27_v10 = vld [vmem:[%s239_s1] sm:$0x3]  ;;  %s187_s1 = smov [#allocation5]  }
  0x15   :  { %s119_s2 = sshll.u32 %s187_s1, 4  ;;  %s120_s2 = int_to_ptr.vmem [resolvable:$true] %s119_s2 }
  0x16   :  { %v32_v7 = vsub.s32 0, %v31_v3  ;;  %v36_v8 = vsub.s32 1, %v31_v3  ;;  %vm69_vm0 = vcmp.lt.s32.totalorder %v61_v4, 127  ;;  %vm62_vm1 = vcmp.lt.s32.totalorder %v61_v4, 112  ;;  %s158_s4 = scalar_lea.vmem %s120_s2, 32  ;;  %p163_p9 = scmp.lt.s32.totalorder %s120_s2, %s120_s2 }
  0x17   :  { %67 = vrot.lane.b32.xlu1 %v55_v1, %s185_s24  ;;  %58 = vrot.lane.b32.xlu0 %v55_v1, %s186_s25  ;;  %vm108_vm2 = vcmp.eq.s32.totalorder %v31_v3, 0  ;;  %p159_p8 = scmp.ne.s32.totalorder %s120_s2, %s158_s4  ;;  %p164_p10 = scmp.lt.s32.totalorder %s158_s4, %s158_s4 }
  0x18   :  { %v44_v13 = vrot.slane %v28_v9, %v32_v7  ;;  %v48_v14 = vrot.slane %v28_v9, %v36_v8  ;;  %v33_v15 = vrot.slane %v27_v10, %v32_v7  ;;  %v37_v16 = vrot.slane %v27_v10, %v36_v8 }
  0x19   :  { %p165_p11 = por %p164_p10, %p163_p9 }
  0x1b   :  { %p166_p12 = pnand %p165_p11, %p159_p8 }
  0x85   :  { %v66_v5 = vpop.permute.xlu1 %65  ;;  %v57_v6 = vpop.permute.xlu0 %56 }
  0x89   :  { %v68_v11 = vpop.permute.xlu1 %67  ;;  %v59_v12 = vpop.permute.xlu0 %58 }
  0x8a   :  { %v70_v17 = vsel %vm69_vm0, %v66_v5, %v68_v11  ;;  %v71_v18 = vsel %vm69_vm0, %v68_v11, %v66_v5  ;;  %v63_v19 = vsel %vm62_vm1, %v57_v6, %v59_v12  ;;  %v64_v20 = vsel %vm62_vm1, %v59_v12, %v57_v6 }
  0x8b   :  { %v76_v21 = vsub.f32 %v70_v17, %v54_v0  ;;  %v77_v22 = vsub.f32 %v71_v18, %v55_v1  ;;  %v72_v23 = vsub.f32 %v63_v19, %v54_v0  ;;  %v73_v24 = vsub.f32 %v64_v20, %v55_v1 }
  0x8d   :  { %v78_v25 = vmul.f32 %v76_v21, %v44_v13  ;;  %v79_v26 = vmul.f32 %v77_v22, %v48_v14  ;;  %v74_v27 = vmul.f32 %v72_v23, %v33_v15  ;;  %v75_v28 = vmul.f32 %v73_v24, %v37_v16 }
  0x8f   :  { %v92_v29 = vmul.f32 %v78_v25, %v78_v25  ;;  %v93_v30 = vmul.f32 %v79_v26, %v79_v26  ;;  %v80_v31 = vmul.f32 %v74_v27, %v74_v27  ;;  %v81_v32 = vmul.f32 %v75_v28, %v75_v28 }
  0x91   :  { %v94_v33 = vadd.f32 %v93_v30, %v92_v29  ;;  %v82_v34 = vadd.f32 %v81_v32, %v80_v31 }
  0x93   :  { %95 = vadd.xlane.f32.xlu1 %v94_v33  ;;  %83 = vadd.xlane.f32.xlu0 %v82_v34 }
 0x120   :  { %v96_v35 = vpop.xlane.xlu1 %95  ;;  %v84_v36 = vpop.xlane.xlu0 %83 }
 0x121   :  { %v97_v37 = vrot.slane %v96_v35, 4  ;;  %v85_v38 = vrot.slane %v84_v36, 4 }
 0x123   :  { %v98_v39 = vadd.f32 %v97_v37, %v96_v35  ;;  %v86_v40 = vadd.f32 %v85_v38, %v84_v36 }
 0x125   :  { %v99_v41 = vrot.slane %v98_v39, 2  ;;  %v87_v42 = vrot.slane %v86_v40, 2 }
 0x127   :  { %v100_v43 = vadd.f32 %v99_v41, %v98_v39  ;;  %v88_v44 = vadd.f32 %v87_v42, %v86_v40 }
 0x129   :  { %v89_v45 = vrot.slane %v88_v44, 1  ;;  %v101_v46 = vrot.slane %v100_v43, 1 }
 0x12b   :  { %v90_v47 = vadd.f32 %v89_v45, %v88_v44  ;;  %v102_v48 = vadd.f32 %v101_v46, %v100_v43 }
 0x12d   :  { %128 = vpush %v90_v47 }
 0x12e   :  { %130 = vpush %v102_v48 }
 0x15e   :  { %s129_s29 = spop %128 }
 0x15f   :  { %v109_v49 = vstv %s129_s29  ;;  %s131_s30 = spop %130 }
 0x160   :  { %v110_v50 = vstv %s131_s30 }
 0x161   :  { %v111_v51 = vsel %vm108_vm2, %v109_v49, %v110_v50 }
 0x162   :  { %112 = vst [vmem:[#allocation5] sm:$0x3] %v111_v51 }
 0x163   :  { %169 = shalt.err (!%p166_p12)
}
 0x164   :  { %s170_s7 = scalar_lea.hbm %s241_s3, 32 }
 0x165   :  { %p171_p13 = scmp.ne.s32.totalorder %s241_s3, %s170_s7  ;;  %p174_p0 = scmp.lt.u32.totalorder %s170_s7, %s241_s3 }
 0x167   :  { %p176_p1 = pnand %p174_p0, %p171_p13 }
 0x169   :  { %179 = shalt.err (!%p176_p1)
}
 0x16a   :  { %122 = dma.vmem_to_hbm [thread:$0]  %s120_s2, 32, %s241_s3, [#allocation4]  }
 0x16b   :  { %182 = dma.done.wait [#allocation4], 32  }
 0x16c   :  { %183 = vsyncadd [#allocation4], 4294967264 }
 0x16d   :  { %126 = vsyncpa [#allocation3], 1 }
 0x16e   :  { %127 = vsyncpa [#allocation4], 1 }

</bundles_post_ra>
